<compile_context>
chip_gen: v6e
topology: v6e:2x2x1
jax: 0.10.0
libtpu: 0.0.40
codegen_flags: <defaults>
</compile_context>

<pallas_src>
import jax
import jax.numpy as jnp
from jax.experimental import pallas as pl
from jax.experimental.pallas import tpu as pltpu


def _masked_ce_block_kernel(out_ref, tgt_ref, mask_ref, psum_ref, pcnt_ref):
    x = out_ref[...].astype(jnp.float32)   # (TR, C) logits
    t = tgt_ref[...].astype(jnp.float32)   # (TR, C) target scores
    m = mask_ref[...]                      # (TR, 1) 0/1 float mask

    # Stable logsumexp over the class (lane) axis.
    mx = jnp.max(x, axis=-1, keepdims=True)
    lse = mx + jnp.log(jnp.sum(jnp.exp(x - mx), axis=-1, keepdims=True))  # (TR,1)

    # gt = argmax(target, -1); pick the corresponding logit via a one-hot.
    # (ties resolve to the first maximal index, matching torch.argmax)
    idx = jnp.argmax(t, axis=-1)                             # (TR,)
    iota = jax.lax.broadcasted_iota(jnp.int32, x.shape, 1)   # (TR, C)
    onehot = (iota == idx[:, None]).astype(jnp.float32)
    picked = jnp.sum(x * onehot, axis=-1, keepdims=True)     # (TR, 1)

    loss_row = (lse - picked) * m                            # (TR, 1)

    # Each grid step owns one full (8,128) output tile -> disjoint writes,
    # so the grid axis can be marked "parallel" (no cross-step accumulator).
    psum_ref[...] = jnp.broadcast_to(jnp.sum(loss_row).reshape(1, 1), (8, 128))
    pcnt_ref[...] = jnp.broadcast_to(jnp.sum(m).reshape(1, 1), (8, 128))


def masked_cross_entropy(out, target, mask, *, tile_rows=2048):
    """out, target: [B, T, C]; mask: [B, T] bool. Returns scalar f32 loss."""
    assert out.shape == target.shape, "pred and target should have the same size"
    assert tile_rows % 8 == 0, "tile_rows must be a multiple of 8"
    B, T, C = out.shape
    R = B * T

    out2 = out.reshape(R, C)
    tgt2 = target.reshape(R, C)
    mask2 = mask.reshape(R, 1).astype(jnp.float32)

    # Row tile: as large as allowed (amortizes per-step pipeline overhead),
    # but never larger than the (8-rounded) problem itself.
    tr = min(tile_rows, ((R + 7) // 8) * 8)
    r_pad = ((R + tr - 1) // tr) * tr
    pad = r_pad - R
    if pad:
        # Zero-pad logits/targets (finite -> finite lse) and mask=0 so padded
        # rows contribute exactly 0 to both the sum and the count.
        out2 = jnp.pad(out2, ((0, pad), (0, 0)))
        tgt2 = jnp.pad(tgt2, ((0, pad), (0, 0)))
        mask2 = jnp.pad(mask2, ((0, pad), (0, 0)))
    g = r_pad // tr

    psum, pcnt = pl.pallas_call(
        _masked_ce_block_kernel,
        out_shape=(
            jax.ShapeDtypeStruct((8 * g, 128), jnp.float32),  # per-block loss sums
            jax.ShapeDtypeStruct((8 * g, 128), jnp.float32),  # per-block mask counts
        ),
        grid=(g,),
        in_specs=[
            pl.BlockSpec((tr, C), lambda i: (i, 0)),
            pl.BlockSpec((tr, C), lambda i: (i, 0)),
            pl.BlockSpec((tr, 1), lambda i: (i, 0)),
        ],
        out_specs=(
            pl.BlockSpec((8, 128), lambda i: (i, 0)),
            pl.BlockSpec((8, 128), lambda i: (i, 0)),
        ),
        compiler_params=pltpu.CompilerParams(
            dimension_semantics=("parallel",),
        ),
    )(out2, tgt2, mask2)

    total = jnp.sum(psum[::8, 0])
    count = jnp.sum(pcnt[::8, 0])
    # NB: if no rows are masked this is 0/0 = NaN, which matches
    # torch.nn.CrossEntropyLoss over an empty selection.
    return total / count


def _reference(out, target, mask):
    R = out.shape[0] * out.shape[1]
    C = out.shape[-1]
    x = out.reshape(R, C).astype(jnp.float32)
    t = target.reshape(R, C).astype(jnp.float32)
    m = mask.reshape(R).astype(jnp.float32)
    lse = jax.scipy.special.logsumexp(x, axis=-1)
    gt = jnp.argmax(t, axis=-1)
    picked = jnp.take_along_axis(x, gt[:, None], axis=-1)[:, 0]
    per_row = lse - picked
    return jnp.sum(per_row * m) / jnp.sum(m)


if __name__ == "__main__":
    key = jax.random.PRNGKey(0)

    # Small shape consistent with the module's forward.
    k1, k2, k3 = jax.random.split(key, 3)
    B, T, C = 2, 8, 32
    out = jax.random.normal(k1, (B, T, C), dtype=jnp.float32)
    target = jax.random.normal(k2, (B, T, C), dtype=jnp.float32)
    mask = jax.random.uniform(k3, (B, T)) > 0.3
    mask = mask.at[0, 0].set(True)  # guarantee at least one selected row

    loss = masked_cross_entropy(out, target, mask)
    loss = jax.block_until_ready(loss)
    ref = _reference(out, target, mask)
    assert jnp.allclose(loss, ref, atol=1e-5, rtol=1e-5), (loss, ref)

    # Second check: non-tile-divisible row count -> exercises padding and the
    # multi-block ("parallel") partial-reduction path.
    k4, k5, k6 = jax.random.split(jax.random.PRNGKey(1), 3)
    B2, T2 = 4, 600  # R = 2400, not a multiple of tile_rows=2048
    out2 = jax.random.normal(k4, (B2, T2, C), dtype=jnp.float32)
    target2 = jax.random.normal(k5, (B2, T2, C), dtype=jnp.float32)
    mask2 = jax.random.uniform(k6, (B2, T2)) > 0.3
    mask2 = mask2.at[0, 0].set(True)

    loss2 = masked_cross_entropy(out2, target2, mask2)
    loss2 = jax.block_until_ready(loss2)
    ref2 = _reference(out2, target2, mask2)
    assert jnp.allclose(loss2, ref2, atol=1e-4, rtol=1e-5), (loss2, ref2)

    print("KERNEL_OK")
</pallas_src>

<mosaic_0001>
module attributes {stable_mosaic.version = 11 : i64} {
  func.func @_masked_ce_block_kernel(%arg0: i32, %arg1: memref<16x32xf32, #tpu.memory_space<vmem>>, %arg2: memref<16x32xf32, #tpu.memory_space<vmem>>, %arg3: memref<16x1xf32, #tpu.memory_space<vmem>>, %arg4: memref<8x128xf32, #tpu.memory_space<vmem>>, %arg5: memref<8x128xf32, #tpu.memory_space<vmem>>) attributes {dimension_semantics = [#tpu.dimension_semantics<parallel>], iteration_bounds = array<i64: 1>, scalar_prefetch = 0 : i64, scratch_operands = 0 : i64, tpu.core_type = #tpu.core_type<tc>, window_params = [{transform_indices = @transform_0, window_bounds = array<i64: 16, 32>}, {transform_indices = @transform_1, window_bounds = array<i64: 16, 32>}, {transform_indices = @transform_2, window_bounds = array<i64: 16, 1>}, {transform_indices = @transform_3, window_bounds = array<i64: 8, 128>}, {transform_indices = @transform_4, window_bounds = array<i64: 8, 128>}]} {
    %c0 = arith.constant 0 : index
    %c0_0 = arith.constant 0 : index
    %0 = vector.load %arg1[%c0, %c0_0] : memref<16x32xf32, #tpu.memory_space<vmem>>, vector<16x32xf32>
    %c0_1 = arith.constant 0 : index
    %c0_2 = arith.constant 0 : index
    %1 = vector.load %arg2[%c0_1, %c0_2] : memref<16x32xf32, #tpu.memory_space<vmem>>, vector<16x32xf32>
    %c0_3 = arith.constant 0 : index
    %c0_4 = arith.constant 0 : index
    %2 = vector.load %arg3[%c0_3, %c0_4] : memref<16x1xf32, #tpu.memory_space<vmem>>, vector<16x1xf32>
    %cst = arith.constant dense<0xFF800000> : vector<16xf32>
    %3 = vector.multi_reduction <maximumf>, %0, %cst [1] : vector<16x32xf32> to vector<16xf32>
    %4 = vector.shape_cast %3 : vector<16xf32> to vector<16x1xf32>
    %5 = vector.broadcast %4 : vector<16x1xf32> to vector<16x32xf32>
    %6 = arith.subf %0, %5 : vector<16x32xf32>
    %7 = math.exp %6 : vector<16x32xf32>
    %cst_5 = arith.constant dense<0.000000e+00> : vector<16xf32>
    %8 = vector.multi_reduction <add>, %7, %cst_5 [1] : vector<16x32xf32> to vector<16xf32>
    %9 = vector.shape_cast %8 : vector<16xf32> to vector<16x1xf32>
    %10 = math.log %9 : vector<16x1xf32>
    %11 = arith.addf %4, %10 : vector<16x1xf32>
    %12 = tpu.reduce_index %1 {axis = 1 : i32, kind = #tpu.reduction_kind<arg_max>} : vector<16x32xf32> -> vector<16xi32>
    %13 = tpu.iota {dimensions = array<i32: 1>} : vector<16x32xi32>
    %14 = vector.shape_cast %12 : vector<16xi32> to vector<16x1xi32>
    %15 = vector.broadcast %14 : vector<16x1xi32> to vector<16x32xi32>
    %16 = arith.cmpi eq, %13, %15 : vector<16x32xi32>
    %17 = arith.extui %16 : vector<16x32xi1> to vector<16x32xi32>
    %18 = arith.sitofp %17 : vector<16x32xi32> to vector<16x32xf32>
    %19 = arith.mulf %0, %18 : vector<16x32xf32>
    %cst_6 = arith.constant dense<0.000000e+00> : vector<16xf32>
    %20 = vector.multi_reduction <add>, %19, %cst_6 [1] : vector<16x32xf32> to vector<16xf32>
    %21 = vector.shape_cast %20 : vector<16xf32> to vector<16x1xf32>
    %22 = arith.subf %11, %21 : vector<16x1xf32>
    %23 = arith.mulf %22, %2 : vector<16x1xf32>
    %24 = vector.shape_cast %23 : vector<16x1xf32> to vector<1x16x1xf32>
    %cst_7 = arith.constant dense<0.000000e+00> : vector<1xf32>
    %25 = vector.multi_reduction <add>, %24, %cst_7 [1, 2] : vector<1x16x1xf32> to vector<1xf32>
    %26 = vector.shape_cast %25 : vector<1xf32> to vector<1x1x1xf32>
    %27 = vector.extract %26[0, 0, 0] : f32 from vector<1x1x1xf32>
    %28 = vector.broadcast %27 : f32 to vector<1x1xf32>
    %29 = vector.shape_cast %28 : vector<1x1xf32> to vector<1x1xf32>
    %30 = vector.broadcast %29 : vector<1x1xf32> to vector<8x128xf32>
    %c0_8 = arith.constant 0 : index
    %c0_9 = arith.constant 0 : index
    %31 = vector.load %arg4[%c0_8, %c0_9] : memref<8x128xf32, #tpu.memory_space<vmem>>, vector<8x128xf32>
    tpu.vector_store %arg4[%c0_8, %c0_9], %30 {strides = array<i32>} : memref<8x128xf32, #tpu.memory_space<vmem>>, vector<8x128xf32>,
    %32 = vector.shape_cast %2 : vector<16x1xf32> to vector<1x16x1xf32>
    %cst_10 = arith.constant dense<0.000000e+00> : vector<1xf32>
    %33 = vector.multi_reduction <add>, %32, %cst_10 [1, 2] : vector<1x16x1xf32> to vector<1xf32>
    %34 = vector.shape_cast %33 : vector<1xf32> to vector<1x1x1xf32>
    %35 = vector.extract %34[0, 0, 0] : f32 from vector<1x1x1xf32>
    %36 = vector.broadcast %35 : f32 to vector<1x1xf32>
    %37 = vector.shape_cast %36 : vector<1x1xf32> to vector<1x1xf32>
    %38 = vector.broadcast %37 : vector<1x1xf32> to vector<8x128xf32>
    %c0_11 = arith.constant 0 : index
    %c0_12 = arith.constant 0 : index
    %39 = vector.load %arg5[%c0_11, %c0_12] : memref<8x128xf32, #tpu.memory_space<vmem>>, vector<8x128xf32>
    tpu.vector_store %arg5[%c0_11, %c0_12], %38 {strides = array<i32>} : memref<8x128xf32, #tpu.memory_space<vmem>>, vector<8x128xf32>,
    return
  }
  func.func @transform_0(%arg0: i32) -> (i32, i32) {
    %c0_i32 = arith.constant 0 : i32
    %c0_i32_0 = arith.constant 0 : i32
    return %arg0, %c0_i32 : i32, i32
  }
  func.func @transform_1(%arg0: i32) -> (i32, i32) {
    %c0_i32 = arith.constant 0 : i32
    %c0_i32_0 = arith.constant 0 : i32
    return %arg0, %c0_i32 : i32, i32
  }
  func.func @transform_2(%arg0: i32) -> (i32, i32) {
    %c0_i32 = arith.constant 0 : i32
    %c0_i32_0 = arith.constant 0 : i32
    return %arg0, %c0_i32 : i32, i32
  }
  func.func @transform_3(%arg0: i32) -> (i32, i32) {
    %c0_i32 = arith.constant 0 : i32
    %c0_i32_0 = arith.constant 0 : i32
    return %arg0, %c0_i32 : i32, i32
  }
  func.func @transform_4(%arg0: i32) -> (i32, i32) {
    %c0_i32 = arith.constant 0 : i32
    %c0_i32_0 = arith.constant 0 : i32
    return %arg0, %c0_i32 : i32, i32
  }
}

</mosaic_0001>

<bundles_post_ra>
// kernel: tpu_custom_call.1
= control target key start
LH: loop header
LB: loop body
LE: loop exit
PB: predicated region body
PF: predicated region fallthrough
CT: control target
= control target key end

     0   :  { %10 = vsyncpa [#allocation3], 0  ;;  %s297_s0 = inlined_call_operand.vmem [shape: f32[16,32], index: 0, kind: input, shape index: {}]   ;;  %s298_s1 = inlined_call_operand.hbm [shape: f32[16,32], index: 1, kind: input, shape index: {}]   ;;  %s299_s2 = inlined_call_operand.vmem [shape: f32[16,1], index: 2, kind: input, shape index: {}]   ;;  %s300_s3 = inlined_call_operand.hbm [shape: f32[8,128], index: 3, kind: output, shape index: {0}]   ;;  %s301_s4 = inlined_call_operand.hbm [shape: f32[8,128], index: 4, kind: output, shape index: {1}]  }
   0x1   :  { %11 = vsyncpa [#allocation4], 0 }
   0x2   :  { %12 = vsyncpa [#allocation7], 0  ;;  %s233_s15 = smov [#allocation2]  }
   0x3   :  { %s20_s16 = sshll.u32 %s233_s15, 4  ;;  %s21_s16 = int_to_ptr.vmem [resolvable:$true] %s20_s16 }
   0x4   :  { %s175_s17 = scalar_lea.vmem %s21_s16, 256  ;;  %p180_p1 = scmp.lt.s32.totalorder %s21_s16, %s21_s16 }
   0x5   :  { %p176_p0 = scmp.ne.s32.totalorder %s21_s16, %s175_s17  ;;  %p181_p2 = scmp.lt.s32.totalorder %s175_s17, %s175_s17 }
   0x7   :  { %p182_p3 = por %p181_p2, %p180_p1 }
   0x9   :  { %p183_p4 = pnand %p182_p3, %p176_p0 }
   0xb   :  { %186 = shalt.err (!%p183_p4)
}
   0xc   :  { %s234_s18 = smov 128   ;;  %s235_s19 = smov 8  }
   0xd   :  { %26 = dma.hbm_to_vmem [thread:$0]  %s298_s1, 256, %s21_s16, [#allocation3], %s234_s18, %s234_s18, %s235_s19  }
   0xe   :  { %227 = dma.done.wait [#allocation3], 256  }
   0xf   :  { %228 = vsyncadd [#allocation3], 4294967040  ;;  %vm38_vm0 = vcmask 261120   ;;  %v32_v0 = vld [vmem:[%s297_s0] sm:$0xff]  ;;  %v33_v1 = vld [vmem:[%s297_s0 + $0x8] sm:$0xff]  ;;  %v69_v11 = vlaneseq  ;;  %v236_v18 = vmov 0.0  }
  0x10   :  { %v34_v2 = vld [vmem:[#allocation2] sm:$0xff]  ;;  %v39_v3 = vsel %vm38_vm0, %v32_v0, -inf  ;;  %v35_v5 = vld [vmem:[#allocation2 + $0x8] sm:$0xff]  ;;  %v42_v6 = vsel %vm38_vm0, %v33_v1, -inf  ;;  %vm89_vm3 = vcmask 7168   ;;  %s238_s29 = smov [#allocation6]  }
  0x11   :  { %v63_v4 = vsel %vm38_vm0, %v34_v2, -inf  ;;  %40 = vmax.xlane.f32.xlu0 %v39_v3  ;;  %v66_v7 = vsel %vm38_vm0, %v35_v5, -inf  ;;  %v70_v16 = vand.u32 127, %v69_v11  ;;  %v36_v29 = vld [vmem:[%s299_s2] sm:$0xff]  ;;  %v37_v30 = vld [vmem:[%s299_s2 + $0x8] sm:$0xff]  ;;  %s237_s2 = smov [#allocation5]  }
  0x12   :  { %64 = vmax.index.xlane.f32.xlu1 %v63_v4  ;;  %v104_v31 = vsel %vm89_vm3, %v36_v29, 0.0  ;;  %v105_v32 = vsel %vm89_vm3, %v37_v30, 0.0  ;;  %s124_s28 = sshll.u32 %s237_s2, 4  ;;  %s134_s30 = sshll.u32 %s238_s29, 4  ;;  %s125_s28 = int_to_ptr.vmem [resolvable:$true] %s124_s28  ;;  %s135_s30 = int_to_ptr.vmem [resolvable:$true] %s134_s30 }
  0x13   :  { %v106_v33 = vadd.f32 %v105_v32, %v104_v31  ;;  %s187_s7 = scalar_lea.vmem %s125_s28, 128  ;;  %p192_p6 = scmp.lt.s32.totalorder %s125_s28, %s125_s28 }
  0x14   :  { %p188_p5 = scmp.ne.s32.totalorder %s125_s28, %s187_s7  ;;  %p193_p7 = scmp.lt.s32.totalorder %s187_s7, %s187_s7 }
  0x15   :  { %43 = vmax.xlane.f32.xlu0 %v42_v6 }
  0x16   :  { %67 = vmax.index.xlane.f32.xlu1 %v66_v7  ;;  %p194_p8 = por %p193_p7, %p192_p6 }
  0x18   :  { %p195_p9 = pnand %p194_p8, %p188_p5 }
  0x9a   :  { %v41_v8 = vpop.xlane.xlu0 %40 }
  0x9b   :  { %v45_v9 = vsub.f32 %v32_v0, %v41_v8  ;;  %v65_v14 = vpop.xlane.xlu1 %64 }
  0x9c   :  { %vm71_vm1 = vcmp.eq.s32.totalorder %v70_v16, %v65_v14 }
  0x9d   :  { %v47_v10 = vmul.f32 1.442695, %v45_v9  ;;  %v147_v19 = vsel %vm71_vm1, 1.0, %v236_v18 }
  0x9e   :  { %v44_v12 = vpop.xlane.xlu0 %43  ;;  %v77_v20 = vmul.f32 %v147_v19, %v32_v0 }
  0x9f   :  { %159 = vpow2.f32 %v47_v10  ;;  %v46_v13 = vsub.f32 %v33_v1, %v44_v12  ;;  %v68_v17 = vpop.xlane.xlu1 %67 }
  0xa0   :  { %vm72_vm2 = vcmp.eq.s32.totalorder %v70_v16, %v68_v17  ;;  %v79_v24 = vsel %vm38_vm0, %v77_v20, 0.0 }
  0xa1   :  { %v49_v15 = vmul.f32 1.442695, %v46_v13  ;;  %v148_v22 = vsel %vm72_vm2, 1.0, %v236_v18 }
  0xa2   :  { %v78_v25 = vmul.f32 %v148_v22, %v33_v1 }
  0xa3   :  { %161 = vpow2.f32 %v49_v15 }
  0xa4   :  { %v82_v28 = vsel %vm38_vm0, %v78_v25, 0.0 }
  0xac   :  { %v160_v21 = vpop.eup %159 }
  0xad   :  { %v51_v23 = vsel %vm38_vm0, %v160_v21, 0.0 }
  0xae   :  { %52 = vadd.xlane.f32.xlu0 %v51_v23 }
  0xb0   :  { %v162_v26 = vpop.eup %161 }
  0xb1   :  { %v54_v27 = vsel %vm38_vm0, %v162_v26, 0.0 }
  0xb2   :  { %55 = vadd.xlane.f32.xlu1 %v54_v27  ;;  %80 = vadd.xlane.f32.xlu0 %v79_v24 }
  0xb6   :  { %83 = vadd.xlane.f32.xlu1 %v82_v28 }
  0xba   :  { %107 = vadd.xlane.f32.xlu1 %v106_v33 }
 0x137   :  { %v53_v34 = vpop.xlane.xlu0 %52 }
 0x138   :  { %163 = vlog2.f32 %v53_v34 }
 0x13b   :  { %v56_v35 = vpop.xlane.xlu1 %55  ;;  %v81_v38 = vpop.xlane.xlu0 %80 }
 0x13c   :  { %165 = vlog2.f32 %v56_v35 }
 0x13f   :  { %v84_v43 = vpop.xlane.xlu1 %83 }
 0x143   :  { %v108_v51 = vpop.xlane.xlu1 %107 }
 0x144   :  { %v109_v52 = vrot.slane %v108_v51, 4 }
 0x145   :  { %v164_v36 = vpop.eup %163 }
 0x146   :  { %v58_v37 = vmul.f32 0.6931472, %v164_v36  ;;  %v110_v53 = vadd.f32 %v109_v52, %v108_v51 }
 0x148   :  { %v61_v39 = vadd.f32 %v58_v37, %v41_v8  ;;  %v111_v54 = vrot.slane %v110_v53, 2 }
 0x149   :  { %v166_v40 = vpop.eup %165 }
 0x14a   :  { %v60_v41 = vmul.f32 0.6931472, %v166_v40  ;;  %v85_v42 = vsub.f32 %v61_v39, %v81_v38  ;;  %v112_v58 = vadd.f32 %v111_v54, %v110_v53 }
 0x14c   :  { %v62_v44 = vadd.f32 %v60_v41, %v44_v12  ;;  %v87_v45 = vmul.f32 %v85_v42, %v36_v29  ;;  %v113_v61 = vrot.slane %v112_v58, 1 }
 0x14e   :  { %v86_v46 = vsub.f32 %v62_v44, %v84_v43  ;;  %v90_v48 = vsel %vm89_vm3, %v87_v45, 0.0  ;;  %v114_v0 = vadd.f32 %v113_v61, %v112_v58 }
 0x150   :  { %v88_v47 = vmul.f32 %v86_v46, %v37_v30 }
 0x152   :  { %v91_v49 = vsel %vm89_vm3, %v88_v47, 0.0 }
 0x153   :  { %v92_v50 = vadd.f32 %v91_v49, %v90_v48 }
 0x155   :  { %93 = vadd.xlane.f32.xlu0 %v92_v50 }
 0x1de   :  { %v94_v55 = vpop.xlane.xlu0 %93 }
 0x1df   :  { %v95_v56 = vrot.slane %v94_v55, 4 }
 0x1e1   :  { %v96_v57 = vadd.f32 %v95_v56, %v94_v55 }
 0x1e3   :  { %v97_v59 = vrot.slane %v96_v57, 2 }
 0x1e5   :  { %v98_v60 = vadd.f32 %v97_v59, %v96_v57 }
 0x1e7   :  { %v99_v62 = vrot.slane %v98_v60, 1 }
 0x1e9   :  { %v100_v63 = vadd.f32 %v99_v62, %v98_v60 }
 0x1eb   :  { %149 = vpush %v100_v63 }
 0x1ec   :  { %151 = vpush %v114_v0 }
 0x21c   :  { %s150_s5 = spop %149 }
 0x21d   :  { %v102_v1 = vstv %s150_s5  ;;  %s152_s6 = spop %151 }
 0x21e   :  { %103 = vst [vmem:[#allocation5] sm:$0xff] %v102_v1  ;;  %v116_v2 = vstv %s152_s6 }
 0x21f   :  { %117 = vst [vmem:[#allocation6] sm:$0xff] %v116_v2 }
 0x220   :  { %198 = shalt.err (!%p195_p9)
}
 0x221   :  { %127 = dma.vmem_to_hbm [thread:$0]  %s125_s28, 128, %s300_s3, [#allocation4]  }
 0x222   :  { %s207_s10 = scalar_lea.vmem %s135_s30, 128  ;;  %p212_p11 = scmp.lt.s32.totalorder %s135_s30, %s135_s30 }
 0x223   :  { %p208_p10 = scmp.ne.s32.totalorder %s135_s30, %s207_s10  ;;  %p213_p12 = scmp.lt.s32.totalorder %s207_s10, %s207_s10 }
 0x225   :  { %p214_p13 = por %p213_p12, %p212_p11 }
 0x227   :  { %p215_p0 = pnand %p214_p13, %p208_p10 }
 0x229   :  { %218 = shalt.err (!%p215_p0)
}
 0x22a   :  { %137 = dma.vmem_to_hbm [thread:$0]  %s135_s30, 128, %s301_s4, [#allocation7]  }
 0x22b   :  { %229 = dma.done.wait [#allocation4], 128  }
 0x22c   :  { %230 = vsyncadd [#allocation4], 4294967168 }
 0x22d   :  { %231 = dma.done.wait [#allocation7], 128  }
 0x22e   :  { %232 = vsyncadd [#allocation7], 4294967168 }
 0x22f   :  { %144 = vsyncpa [#allocation3], 1 }
 0x230   :  { %145 = vsyncpa [#allocation4], 1 }
 0x231   :  { %146 = vsyncpa [#allocation7], 1 }

</bundles_post_ra>
